<compile_context>
chip_gen: v5e
topology: v5e:2x2
jax: 0.10.0
libtpu: 0.0.40
codegen_flags: <defaults>
</compile_context>

<pallas_src>
import jax
import jax.numpy as jnp
from jax import lax
from jax.experimental import pallas as pl
from jax.experimental.pallas import tpu as pltpu


def _round_up(x, m):
    return -(-x // m) * m


def _default_vmem_limit_bytes():
    """~3/4 of detected per-core VMEM (96 MiB on v5e/v6e, 48 MiB on v7x); safe fallback."""
    cap = 64 * 1024 * 1024                      # conservative default (v7x per-TC VMEM)
    try:
        info = pltpu.get_tpu_info()
        cap = int(getattr(info, "vmem_capacity_bytes", cap)) or cap
    except Exception:
        pass
    return max(32 * 1024 * 1024, min(cap * 3 // 4, 112 * 1024 * 1024))


def _step_vmem_bytes(C, K, W, TH, mxu_bytes):
    """Rough per-grid-step VMEM footprint (double-buffered I/O + weights + live temps)."""
    p = K // 2
    Wp = W + 2 * p
    THp = TH + 4 * p
    L = THp * Wp
    L2 = TH * Wp
    Lx = L + 2 * (p * Wp + p)
    C8 = _round_up(C, 8)
    kk = K * K
    io = 2 * C8 * Lx * 4 + 2 * 8 * L * 4 + 2 * C8 * L2 * 4
    wts = 2 * 2 * kk * C8 * C8 * mxu_bytes + 4 * 2 * C8 * 4
    tmp = (C8 * Lx * mxu_bytes                      # bf16 view of the input tile
           + C8 * L * (4 + 4 + mxu_bytes)           # acc1 + act + actq
           + C8 * L2 * 12                           # acc2 + h2 + res
           + 2 * C8 * L * mxu_bytes)                # a couple of live tap slices
    return io + wts + tmp


def _choose_row_tile(N, C, H, W, K, vmem_limit, mxu_bytes):
    cap = max(8, _round_up(H, 8))
    cands = [th for th in (256, 192, 128, 96, 64, 48, 32, 24, 16, 8) if th <= cap] or [8]
    fit = [th for th in cands
           if int(1.5 * _step_vmem_bytes(C, K, W, th, mxu_bytes)) <= vmem_limit]
    if not fit:
        fit = [cands[-1]]
    # prefer >=4 total grid steps (software pipeline depth + v7x's two TensorCores)
    good = [th for th in fit if N * (-(-H // th)) >= 4]
    return (good or fit)[0]


def _make_resblock_kernel(C, K, Wp, TH, res_scale, mxu_dtype):
    p = K // 2
    THp = TH + 4 * p
    L = THp * Wp                     # full per-tile flat grid (conv1 output, lane axis)
    L2 = TH * Wp                     # valid output rows only (conv2 output / writeback)
    maxd = p * Wp + p                # max |tap offset| in flat index space
    c0 = 2 * p * Wp                  # flat position of the first valid output row
    deltas = [(ky - p) * Wp + (kx - p) for ky in range(K) for kx in range(K)]

    def kernel(x_ref, mask_ref, w1_ref, b1_ref, w2_ref, b2_ref, o_ref):
        xf = x_ref[0, 0]                              # (C, Lx) f32, zero margins of width maxd
        xq = xf.astype(mxu_dtype)                     # single cast BEFORE tap slicing
        mask = mask_ref[0]                            # (1, L) f32 validity of conv1 output

        # ---- conv1: K*K accumulating tap matmuls over the full tile (incl. halo rows) ----
        acc1 = None
        for i, d in enumerate(deltas):
            t = jnp.dot(w1_ref[i], xq[:, maxd + d: maxd + d + L],
                        preferred_element_type=jnp.float32)
            acc1 = t if acc1 is None else acc1 + t
        act = jnp.maximum(acc1 + b1_ref[...], 0.0) * mask     # bias + ReLU, zero outside image
        actq = act.astype(mxu_dtype)                          # single cast before conv2 taps

        # ---- conv2: tap matmuls restricted to the TH valid output rows ----
        # All tap reads [c0+d, c0+d+L2) stay inside [0, L): no zero margins / scratch needed.
        acc2 = None
        for i, d in enumerate(deltas):
            t = jnp.dot(w2_ref[i], actq[:, c0 + d: c0 + d + L2],
                        preferred_element_type=jnp.float32)
            acc2 = t if acc2 is None else acc2 + t
        h2 = acc2 + b2_ref[...]

        # ---- residual in f32: res_scale * conv2 + x ----
        res = h2 * res_scale + xf[:, maxd + c0: maxd + c0 + L2]
        o_ref[0, 0] = res.astype(o_ref.dtype)

    return kernel


def resblock_forward(x_nchw, w1, b1, w2, b2, res_scale=1.0, *,
                     row_tile=None, mxu_dtype=jnp.bfloat16, vmem_limit_bytes=None):
    """ResBlock forward. x: [N,C,H,W]; w*: [C_out,C_in,K,K] (PyTorch layout); b*: [C]."""
    N, C, H, W = x_nchw.shape
    Co, Ci, K, K2 = w1.shape
    assert K == K2 and Co == C and Ci == C and w2.shape == w1.shape
    assert K % 2 == 1, "even kernel sizes need asymmetric SAME padding"
    p = K // 2

    mxu_bytes = jnp.dtype(mxu_dtype).itemsize
    if vmem_limit_bytes is None:
        vmem_limit_bytes = _default_vmem_limit_bytes()
    if row_tile is None:
        TH = _choose_row_tile(N, C, H, W, K, vmem_limit_bytes, mxu_bytes)
    else:
        TH = int(row_tile)

    n_th = -(-H // TH)
    Hp = n_th * TH                           # H padded up to a tile multiple (no TH=H fallback)
    THp = TH + 4 * p
    Wp = W + 2 * p
    L = THp * Wp
    L2 = TH * Wp
    maxd = p * Wp + p
    Lx = L + 2 * maxd
    KK = K * K

    xf32 = x_nchw.astype(jnp.float32)

    # ---- glue (plain XLA): zero-pad, cut halo'd row tiles, flatten, add slice margins ----
    xp = jnp.pad(xf32, ((0, 0), (0, 0), (2 * p, 2 * p + (Hp - H)), (p, p)))
    row_idx = jnp.arange(n_th)[:, None] * TH + jnp.arange(THp)[None, :]
    xt = jnp.take(xp, row_idx, axis=2)                       # (N, C, n_th, THp, Wp)
    xt = jnp.transpose(xt, (0, 2, 1, 3, 4)).reshape(N, n_th, C, L)
    xt = jnp.pad(xt, ((0, 0), (0, 0), (0, 0), (maxd, maxd))) # (N, n_th, C, Lx)

    # ---- tiny per-row-tile validity mask (exact zero padding for conv2's input) ----
    yy = jnp.arange(THp)
    img_row = jnp.arange(n_th)[:, None] * TH + yy[None, :] - 2 * p
    row_ok = (img_row >= 0) & (img_row < H)
    cc = jnp.arange(Wp)
    col_ok = (cc >= p) & (cc < p + W)
    mask = (row_ok[:, :, None] & col_ok[None, None, :]).reshape(n_th, 1, L)
    mask = mask.astype(jnp.float32)

    # ---- weights -> per-tap (KK, C_out, C_in) matrices in the MXU operand dtype ----
    def prep_w(w):
        return jnp.transpose(w, (2, 3, 0, 1)).reshape(KK, C, C).astype(mxu_dtype)

    w1m, w2m = prep_w(w1), prep_w(w2)
    b1m = b1.reshape(C, 1).astype(jnp.float32)
    b2m = b2.reshape(C, 1).astype(jnp.float32)

    kernel = _make_resblock_kernel(C, K, Wp, TH, float(res_scale), mxu_dtype)

    out = pl.pallas_call(
        kernel,
        out_shape=jax.ShapeDtypeStruct((N, n_th, C, L2), x_nchw.dtype),
        grid=(N, n_th),
        in_specs=[
            pl.BlockSpec((1, 1, C, Lx), lambda n, r: (n, r, 0, 0)),  # padded input tile
            pl.BlockSpec((1, 1, L), lambda n, r: (r, 0, 0)),         # per-row-tile mask
            pl.BlockSpec((KK, C, C), lambda n, r: (0, 0, 0)),        # weights stay resident
            pl.BlockSpec((C, 1), lambda n, r: (0, 0)),
            pl.BlockSpec((KK, C, C), lambda n, r: (0, 0, 0)),
            pl.BlockSpec((C, 1), lambda n, r: (0, 0)),
        ],
        out_specs=pl.BlockSpec((1, 1, C, L2), lambda n, r: (n, r, 0, 0)),
        compiler_params=pltpu.CompilerParams(
            dimension_semantics=("parallel", "parallel"),
            vmem_limit_bytes=int(vmem_limit_bytes)),
    )(xt, mask, w1m, b1m, w2m, b2m)

    # ---- glue: drop pad columns, restore NCHW, crop padded rows ----
    out = out.reshape(N, n_th, C, TH, Wp)[:, :, :, :, p:p + W]
    out = jnp.transpose(out, (0, 2, 1, 3, 4)).reshape(N, C, Hp, W)
    return out[:, :, :H, :]


def resblock_reference(x, w1, b1, w2, b2, res_scale=1.0, op_dtype=jnp.float32):
    """Plain-XLA reference; op_dtype mirrors the kernel's MXU operand precision."""
    dn = ("NCHW", "OIHW", "NCHW")

    def conv(v, w):
        return lax.conv_general_dilated(
            v.astype(op_dtype), w.astype(op_dtype), (1, 1), "SAME",
            dimension_numbers=dn, preferred_element_type=jnp.float32)

    y = conv(x, w1) + b1[None, :, None, None]
    y = jnp.maximum(y, 0.0)
    y = conv(y, w2) + b2[None, :, None, None]
    return y * res_scale + x.astype(jnp.float32)


if __name__ == "__main__":
    # Small shapes consistent with ResBlock(conv, n_feats=4, kernel_size=3).
    N, C, H, W, K = 2, 4, 16, 16, 3
    res_scale = 1.0

    key = jax.random.PRNGKey(0)
    kx_, kw1, kb1, kw2, kb2 = jax.random.split(key, 5)
    x = jax.random.normal(kx_, (N, C, H, W), jnp.float32)

    fan_in = C * K * K
    bound = 1.0 / (fan_in ** 0.5)
    w1 = jax.random.uniform(kw1, (C, C, K, K), jnp.float32, -bound, bound)
    b1 = jax.random.uniform(kb1, (C,), jnp.float32, -bound, bound)
    w2 = jax.random.uniform(kw2, (C, C, K, K), jnp.float32, -bound, bound)
    b2 = jax.random.uniform(kb2, (C,), jnp.float32, -bound, bound)

    # f32 MXU-operand path (auto tiling / auto VMEM limit): strict check vs f32 reference.
    out_f32 = jax.block_until_ready(
        resblock_forward(x, w1, b1, w2, b2, res_scale, mxu_dtype=jnp.float32))
    ref_f32 = resblock_reference(x, w1, b1, w2, b2, res_scale)
    assert out_f32.shape == (N, C, H, W)
    assert jnp.allclose(out_f32, ref_f32, rtol=1e-3, atol=1e-4), "f32 path mismatch"

    # Non-divisible H exercises the pad-to-tile-multiple path (old TH=H fallback removed).
    H2 = 13
    x2 = jax.random.normal(jax.random.PRNGKey(1), (N, C, H2, W), jnp.float32)
    out_odd = jax.block_until_ready(
        resblock_forward(x2, w1, b1, w2, b2, res_scale, row_tile=8,
                         mxu_dtype=jnp.float32))
    ref_odd = resblock_reference(x2, w1, b1, w2, b2, res_scale)
    assert out_odd.shape == (N, C, H2, W)
    assert jnp.allclose(out_odd, ref_odd, rtol=1e-3, atol=1e-4), "odd-H path mismatch"

    # bf16 MXU-operand fast path (default): check against a bf16-operand reference.
    out_bf16 = jax.block_until_ready(
        resblock_forward(x, w1, b1, w2, b2, res_scale))
    ref_bf16 = resblock_reference(x, w1, b1, w2, b2, res_scale, op_dtype=jnp.bfloat16)
    assert jnp.allclose(out_bf16, ref_bf16, rtol=2e-2, atol=2e-2), "bf16 path mismatch"

    print("KERNEL_OK")
</pallas_src>

<mosaic_0001>
module attributes {stable_mosaic.version = 11 : i64} {
  func.func @kernel(%arg0: i32, %arg1: i32, %arg2: memref<1x1x4x254xf32, #tpu.memory_space<vmem>>, %arg3: memref<1x1x216xf32, #tpu.memory_space<vmem>>, %arg4: memref<9x4x4xf32, #tpu.memory_space<vmem>>, %arg5: memref<4x1xf32, #tpu.memory_space<vmem>>, %arg6: memref<9x4x4xf32, #tpu.memory_space<vmem>>, %arg7: memref<4x1xf32, #tpu.memory_space<vmem>>, %arg8: memref<1x1x4x144xf32, #tpu.memory_space<vmem>>) attributes {dimension_semantics = [#tpu.dimension_semantics<parallel>, #tpu.dimension_semantics<parallel>], iteration_bounds = array<i64: 2, 2>, scalar_prefetch = 0 : i64, scratch_operands = 0 : i64, tpu.core_type = #tpu.core_type<tc>, window_params = [{transform_indices = @transform_0, window_bounds = array<i64: 1, 1, 4, 254>}, {transform_indices = @transform_1, window_bounds = array<i64: 1, 1, 216>}, {pipeline_mode = #tpu.pipeline_mode<synchronous>, transform_indices = @transform_2, window_bounds = array<i64: 9, 4, 4>}, {pipeline_mode = #tpu.pipeline_mode<synchronous>, transform_indices = @transform_3, window_bounds = array<i64: 4, 1>}, {pipeline_mode = #tpu.pipeline_mode<synchronous>, transform_indices = @transform_4, window_bounds = array<i64: 9, 4, 4>}, {pipeline_mode = #tpu.pipeline_mode<synchronous>, transform_indices = @transform_5, window_bounds = array<i64: 4, 1>}, {transform_indices = @transform_6, window_bounds = array<i64: 1, 1, 4, 144>}]} {
    %c0 = arith.constant 0 : index
    %c0_0 = arith.constant 0 : index
    %c0_1 = arith.constant 0 : index
    %c0_2 = arith.constant 0 : index
    %0 = vector.load %arg2[%c0, %c0_0, %c0_1, %c0_2] : memref<1x1x4x254xf32, #tpu.memory_space<vmem>>, vector<1x1x4x254xf32>
    %1 = vector.shape_cast %0 : vector<1x1x4x254xf32> to vector<4x254xf32>
    %c0_3 = arith.constant 0 : index
    %c0_4 = arith.constant 0 : index
    %c0_5 = arith.constant 0 : index
    %2 = vector.load %arg3[%c0_3, %c0_4, %c0_5] : memref<1x1x216xf32, #tpu.memory_space<vmem>>, vector<1x1x216xf32>
    %3 = vector.shape_cast %2 : vector<1x1x216xf32> to vector<1x216xf32>
    %c0_6 = arith.constant 0 : index
    %c0_7 = arith.constant 0 : index
    %c0_8 = arith.constant 0 : index
    %4 = vector.load %arg4[%c0_6, %c0_7, %c0_8] : memref<9x4x4xf32, #tpu.memory_space<vmem>>, vector<1x4x4xf32>
    %5 = vector.shape_cast %4 : vector<1x4x4xf32> to vector<4x4xf32>
    %6 = vector.extract_strided_slice %1 {offsets = [0, 0], sizes = [4, 216], strides = [1, 1]} : vector<4x254xf32> to vector<4x216xf32>
    %cst = arith.constant dense<0.000000e+00> : vector<4x216xf32>
    %7 = tpu.matmul %5, %6, %cst {dimension_numbers = #tpu.dot_dimension_numbers<[1], [0], [0], [1], [0, 0, 1, 1], [], []>} : vector<4x4xf32>, vector<4x216xf32>, vector<4x216xf32> -> vector<4x216xf32>
    %c1 = arith.constant 1 : index
    %c0_9 = arith.constant 0 : index
    %c0_10 = arith.constant 0 : index
    %8 = vector.load %arg4[%c1, %c0_9, %c0_10] : memref<9x4x4xf32, #tpu.memory_space<vmem>>, vector<1x4x4xf32>
    %9 = vector.shape_cast %8 : vector<1x4x4xf32> to vector<4x4xf32>
    %10 = vector.extract_strided_slice %1 {offsets = [0, 1], sizes = [4, 216], strides = [1, 1]} : vector<4x254xf32> to vector<4x216xf32>
    %cst_11 = arith.constant dense<0.000000e+00> : vector<4x216xf32>
    %11 = tpu.matmul %9, %10, %cst_11 {dimension_numbers = #tpu.dot_dimension_numbers<[1], [0], [0], [1], [0, 0, 1, 1], [], []>} : vector<4x4xf32>, vector<4x216xf32>, vector<4x216xf32> -> vector<4x216xf32>
    %12 = arith.addf %7, %11 : vector<4x216xf32>
    %c2 = arith.constant 2 : index
    %c0_12 = arith.constant 0 : index
    %c0_13 = arith.constant 0 : index
    %13 = vector.load %arg4[%c2, %c0_12, %c0_13] : memref<9x4x4xf32, #tpu.memory_space<vmem>>, vector<1x4x4xf32>
    %14 = vector.shape_cast %13 : vector<1x4x4xf32> to vector<4x4xf32>
    %15 = vector.extract_strided_slice %1 {offsets = [0, 2], sizes = [4, 216], strides = [1, 1]} : vector<4x254xf32> to vector<4x216xf32>
    %cst_14 = arith.constant dense<0.000000e+00> : vector<4x216xf32>
    %16 = tpu.matmul %14, %15, %cst_14 {dimension_numbers = #tpu.dot_dimension_numbers<[1], [0], [0], [1], [0, 0, 1, 1], [], []>} : vector<4x4xf32>, vector<4x216xf32>, vector<4x216xf32> -> vector<4x216xf32>
    %17 = arith.addf %12, %16 : vector<4x216xf32>
    %c3 = arith.constant 3 : index
    %c0_15 = arith.constant 0 : index
    %c0_16 = arith.constant 0 : index
    %18 = vector.load %arg4[%c3, %c0_15, %c0_16] : memref<9x4x4xf32, #tpu.memory_space<vmem>>, vector<1x4x4xf32>
    %19 = vector.shape_cast %18 : vector<1x4x4xf32> to vector<4x4xf32>
    %20 = vector.extract_strided_slice %1 {offsets = [0, 18], sizes = [4, 216], strides = [1, 1]} : vector<4x254xf32> to vector<4x216xf32>
    %cst_17 = arith.constant dense<0.000000e+00> : vector<4x216xf32>
    %21 = tpu.matmul %19, %20, %cst_17 {dimension_numbers = #tpu.dot_dimension_numbers<[1], [0], [0], [1], [0, 0, 1, 1], [], []>} : vector<4x4xf32>, vector<4x216xf32>, vector<4x216xf32> -> vector<4x216xf32>
    %22 = arith.addf %17, %21 : vector<4x216xf32>
    %c4 = arith.constant 4 : index
    %c0_18 = arith.constant 0 : index
    %c0_19 = arith.constant 0 : index
    %23 = vector.load %arg4[%c4, %c0_18, %c0_19] : memref<9x4x4xf32, #tpu.memory_space<vmem>>, vector<1x4x4xf32>
    %24 = vector.shape_cast %23 : vector<1x4x4xf32> to vector<4x4xf32>
    %25 = vector.extract_strided_slice %1 {offsets = [0, 19], sizes = [4, 216], strides = [1, 1]} : vector<4x254xf32> to vector<4x216xf32>
    %cst_20 = arith.constant dense<0.000000e+00> : vector<4x216xf32>
    %26 = tpu.matmul %24, %25, %cst_20 {dimension_numbers = #tpu.dot_dimension_numbers<[1], [0], [0], [1], [0, 0, 1, 1], [], []>} : vector<4x4xf32>, vector<4x216xf32>, vector<4x216xf32> -> vector<4x216xf32>
    %27 = arith.addf %22, %26 : vector<4x216xf32>
    %c5 = arith.constant 5 : index
    %c0_21 = arith.constant 0 : index
    %c0_22 = arith.constant 0 : index
    %28 = vector.load %arg4[%c5, %c0_21, %c0_22] : memref<9x4x4xf32, #tpu.memory_space<vmem>>, vector<1x4x4xf32>
    %29 = vector.shape_cast %28 : vector<1x4x4xf32> to vector<4x4xf32>
    %30 = vector.extract_strided_slice %1 {offsets = [0, 20], sizes = [4, 216], strides = [1, 1]} : vector<4x254xf32> to vector<4x216xf32>
    %cst_23 = arith.constant dense<0.000000e+00> : vector<4x216xf32>
    %31 = tpu.matmul %29, %30, %cst_23 {dimension_numbers = #tpu.dot_dimension_numbers<[1], [0], [0], [1], [0, 0, 1, 1], [], []>} : vector<4x4xf32>, vector<4x216xf32>, vector<4x216xf32> -> vector<4x216xf32>
    %32 = arith.addf %27, %31 : vector<4x216xf32>
    %c6 = arith.constant 6 : index
    %c0_24 = arith.constant 0 : index
    %c0_25 = arith.constant 0 : index
    %33 = vector.load %arg4[%c6, %c0_24, %c0_25] : memref<9x4x4xf32, #tpu.memory_space<vmem>>, vector<1x4x4xf32>
    %34 = vector.shape_cast %33 : vector<1x4x4xf32> to vector<4x4xf32>
    %35 = vector.extract_strided_slice %1 {offsets = [0, 36], sizes = [4, 216], strides = [1, 1]} : vector<4x254xf32> to vector<4x216xf32>
    %cst_26 = arith.constant dense<0.000000e+00> : vector<4x216xf32>
    %36 = tpu.matmul %34, %35, %cst_26 {dimension_numbers = #tpu.dot_dimension_numbers<[1], [0], [0], [1], [0, 0, 1, 1], [], []>} : vector<4x4xf32>, vector<4x216xf32>, vector<4x216xf32> -> vector<4x216xf32>
    %37 = arith.addf %32, %36 : vector<4x216xf32>
    %c7 = arith.constant 7 : index
    %c0_27 = arith.constant 0 : index
    %c0_28 = arith.constant 0 : index
    %38 = vector.load %arg4[%c7, %c0_27, %c0_28] : memref<9x4x4xf32, #tpu.memory_space<vmem>>, vector<1x4x4xf32>
    %39 = vector.shape_cast %38 : vector<1x4x4xf32> to vector<4x4xf32>
    %40 = vector.extract_strided_slice %1 {offsets = [0, 37], sizes = [4, 216], strides = [1, 1]} : vector<4x254xf32> to vector<4x216xf32>
    %cst_29 = arith.constant dense<0.000000e+00> : vector<4x216xf32>
    %41 = tpu.matmul %39, %40, %cst_29 {dimension_numbers = #tpu.dot_dimension_numbers<[1], [0], [0], [1], [0, 0, 1, 1], [], []>} : vector<4x4xf32>, vector<4x216xf32>, vector<4x216xf32> -> vector<4x216xf32>
    %42 = arith.addf %37, %41 : vector<4x216xf32>
    %c8 = arith.constant 8 : index
    %c0_30 = arith.constant 0 : index
    %c0_31 = arith.constant 0 : index
    %43 = vector.load %arg4[%c8, %c0_30, %c0_31] : memref<9x4x4xf32, #tpu.memory_space<vmem>>, vector<1x4x4xf32>
    %44 = vector.shape_cast %43 : vector<1x4x4xf32> to vector<4x4xf32>
    %45 = vector.extract_strided_slice %1 {offsets = [0, 38], sizes = [4, 216], strides = [1, 1]} : vector<4x254xf32> to vector<4x216xf32>
    %cst_32 = arith.constant dense<0.000000e+00> : vector<4x216xf32>
    %46 = tpu.matmul %44, %45, %cst_32 {dimension_numbers = #tpu.dot_dimension_numbers<[1], [0], [0], [1], [0, 0, 1, 1], [], []>} : vector<4x4xf32>, vector<4x216xf32>, vector<4x216xf32> -> vector<4x216xf32>
    %47 = arith.addf %42, %46 : vector<4x216xf32>
    %c0_33 = arith.constant 0 : index
    %c0_34 = arith.constant 0 : index
    %48 = vector.load %arg5[%c0_33, %c0_34] : memref<4x1xf32, #tpu.memory_space<vmem>>, vector<4x1xf32>
    %49 = vector.broadcast %48 : vector<4x1xf32> to vector<4x216xf32>
    %50 = arith.addf %47, %49 : vector<4x216xf32>
    %cst_35 = arith.constant 0.000000e+00 : f32
    %51 = vector.broadcast %cst_35 : f32 to vector<4x216xf32>
    %52 = arith.maximumf %50, %51 : vector<4x216xf32>
    %53 = vector.broadcast %3 : vector<1x216xf32> to vector<4x216xf32>
    %54 = arith.mulf %52, %53 : vector<4x216xf32>
    %c0_36 = arith.constant 0 : index
    %c0_37 = arith.constant 0 : index
    %c0_38 = arith.constant 0 : index
    %55 = vector.load %arg6[%c0_36, %c0_37, %c0_38] : memref<9x4x4xf32, #tpu.memory_space<vmem>>, vector<1x4x4xf32>
    %56 = vector.shape_cast %55 : vector<1x4x4xf32> to vector<4x4xf32>
    %57 = vector.extract_strided_slice %54 {offsets = [0, 17], sizes = [4, 144], strides = [1, 1]} : vector<4x216xf32> to vector<4x144xf32>
    %cst_39 = arith.constant dense<0.000000e+00> : vector<4x144xf32>
    %58 = tpu.matmul %56, %57, %cst_39 {dimension_numbers = #tpu.dot_dimension_numbers<[1], [0], [0], [1], [0, 0, 1, 1], [], []>} : vector<4x4xf32>, vector<4x144xf32>, vector<4x144xf32> -> vector<4x144xf32>
    %c1_40 = arith.constant 1 : index
    %c0_41 = arith.constant 0 : index
    %c0_42 = arith.constant 0 : index
    %59 = vector.load %arg6[%c1_40, %c0_41, %c0_42] : memref<9x4x4xf32, #tpu.memory_space<vmem>>, vector<1x4x4xf32>
    %60 = vector.shape_cast %59 : vector<1x4x4xf32> to vector<4x4xf32>
    %61 = vector.extract_strided_slice %54 {offsets = [0, 18], sizes = [4, 144], strides = [1, 1]} : vector<4x216xf32> to vector<4x144xf32>
    %cst_43 = arith.constant dense<0.000000e+00> : vector<4x144xf32>
    %62 = tpu.matmul %60, %61, %cst_43 {dimension_numbers = #tpu.dot_dimension_numbers<[1], [0], [0], [1], [0, 0, 1, 1], [], []>} : vector<4x4xf32>, vector<4x144xf32>, vector<4x144xf32> -> vector<4x144xf32>
    %63 = arith.addf %58, %62 : vector<4x144xf32>
    %c2_44 = arith.constant 2 : index
    %c0_45 = arith.constant 0 : index
    %c0_46 = arith.constant 0 : index
    %64 = vector.load %arg6[%c2_44, %c0_45, %c0_46] : memref<9x4x4xf32, #tpu.memory_space<vmem>>, vector<1x4x4xf32>
    %65 = vector.shape_cast %64 : vector<1x4x4xf32> to vector<4x4xf32>
    %66 = vector.extract_strided_slice %54 {offsets = [0, 19], sizes = [4, 144], strides = [1, 1]} : vector<4x216xf32> to vector<4x144xf32>
    %cst_47 = arith.constant dense<0.000000e+00> : vector<4x144xf32>
    %67 = tpu.matmul %65, %66, %cst_47 {dimension_numbers = #tpu.dot_dimension_numbers<[1], [0], [0], [1], [0, 0, 1, 1], [], []>} : vector<4x4xf32>, vector<4x144xf32>, vector<4x144xf32> -> vector<4x144xf32>
    %68 = arith.addf %63, %67 : vector<4x144xf32>
    %c3_48 = arith.constant 3 : index
    %c0_49 = arith.constant 0 : index
    %c0_50 = arith.constant 0 : index
    %69 = vector.load %arg6[%c3_48, %c0_49, %c0_50] : memref<9x4x4xf32, #tpu.memory_space<vmem>>, vector<1x4x4xf32>
    %70 = vector.shape_cast %69 : vector<1x4x4xf32> to vector<4x4xf32>
    %71 = vector.extract_strided_slice %54 {offsets = [0, 35], sizes = [4, 144], strides = [1, 1]} : vector<4x216xf32> to vector<4x144xf32>
    %cst_51 = arith.constant dense<0.000000e+00> : vector<4x144xf32>
    %72 = tpu.matmul %70, %71, %cst_51 {dimension_numbers = #tpu.dot_dimension_numbers<[1], [0], [0], [1], [0, 0, 1, 1], [], []>} : vector<4x4xf32>, vector<4x144xf32>, vector<4x144xf32> -> vector<4x144xf32>
    %73 = arith.addf %68, %72 : vector<4x144xf32>
    %c4_52 = arith.constant 4 : index
    %c0_53 = arith.constant 0 : index
    %c0_54 = arith.constant 0 : index
    %74 = vector.load %arg6[%c4_52, %c0_53, %c0_54] : memref<9x4x4xf32, #tpu.memory_space<vmem>>, vector<1x4x4xf32>
    %75 = vector.shape_cast %74 : vector<1x4x4xf32> to vector<4x4xf32>
    %76 = vector.extract_strided_slice %54 {offsets = [0, 36], sizes = [4, 144], strides = [1, 1]} : vector<4x216xf32> to vector<4x144xf32>
    %cst_55 = arith.constant dense<0.000000e+00> : vector<4x144xf32>
    %77 = tpu.matmul %75, %76, %cst_55 {dimension_numbers = #tpu.dot_dimension_numbers<[1], [0], [0], [1], [0, 0, 1, 1], [], []>} : vector<4x4xf32>, vector<4x144xf32>, vector<4x144xf32> -> vector<4x144xf32>
    %78 = arith.addf %73, %77 : vector<4x144xf32>
    %c5_56 = arith.constant 5 : index
    %c0_57 = arith.constant 0 : index
    %c0_58 = arith.constant 0 : index
    %79 = vector.load %arg6[%c5_56, %c0_57, %c0_58] : memref<9x4x4xf32, #tpu.memory_space<vmem>>, vector<1x4x4xf32>
    %80 = vector.shape_cast %79 : vector<1x4x4xf32> to vector<4x4xf32>
    %81 = vector.extract_strided_slice %54 {offsets = [0, 37], sizes = [4, 144], strides = [1, 1]} : vector<4x216xf32> to vector<4x144xf32>
    %cst_59 = arith.constant dense<0.000000e+00> : vector<4x144xf32>
    %82 = tpu.matmul %80, %81, %cst_59 {dimension_numbers = #tpu.dot_dimension_numbers<[1], [0], [0], [1], [0, 0, 1, 1], [], []>} : vector<4x4xf32>, vector<4x144xf32>, vector<4x144xf32> -> vector<4x144xf32>
    %83 = arith.addf %78, %82 : vector<4x144xf32>
    %c6_60 = arith.constant 6 : index
    %c0_61 = arith.constant 0 : index
    %c0_62 = arith.constant 0 : index
    %84 = vector.load %arg6[%c6_60, %c0_61, %c0_62] : memref<9x4x4xf32, #tpu.memory_space<vmem>>, vector<1x4x4xf32>
    %85 = vector.shape_cast %84 : vector<1x4x4xf32> to vector<4x4xf32>
    %86 = vector.extract_strided_slice %54 {offsets = [0, 53], sizes = [4, 144], strides = [1, 1]} : vector<4x216xf32> to vector<4x144xf32>
    %cst_63 = arith.constant dense<0.000000e+00> : vector<4x144xf32>
    %87 = tpu.matmul %85, %86, %cst_63 {dimension_numbers = #tpu.dot_dimension_numbers<[1], [0], [0], [1], [0, 0, 1, 1], [], []>} : vector<4x4xf32>, vector<4x144xf32>, vector<4x144xf32> -> vector<4x144xf32>
    %88 = arith.addf %83, %87 : vector<4x144xf32>
    %c7_64 = arith.constant 7 : index
    %c0_65 = arith.constant 0 : index
    %c0_66 = arith.constant 0 : index
    %89 = vector.load %arg6[%c7_64, %c0_65, %c0_66] : memref<9x4x4xf32, #tpu.memory_space<vmem>>, vector<1x4x4xf32>
    %90 = vector.shape_cast %89 : vector<1x4x4xf32> to vector<4x4xf32>
    %91 = vector.extract_strided_slice %54 {offsets = [0, 54], sizes = [4, 144], strides = [1, 1]} : vector<4x216xf32> to vector<4x144xf32>
    %cst_67 = arith.constant dense<0.000000e+00> : vector<4x144xf32>
    %92 = tpu.matmul %90, %91, %cst_67 {dimension_numbers = #tpu.dot_dimension_numbers<[1], [0], [0], [1], [0, 0, 1, 1], [], []>} : vector<4x4xf32>, vector<4x144xf32>, vector<4x144xf32> -> vector<4x144xf32>
    %93 = arith.addf %88, %92 : vector<4x144xf32>
    %c8_68 = arith.constant 8 : index
    %c0_69 = arith.constant 0 : index
    %c0_70 = arith.constant 0 : index
    %94 = vector.load %arg6[%c8_68, %c0_69, %c0_70] : memref<9x4x4xf32, #tpu.memory_space<vmem>>, vector<1x4x4xf32>
    %95 = vector.shape_cast %94 : vector<1x4x4xf32> to vector<4x4xf32>
    %96 = vector.extract_strided_slice %54 {offsets = [0, 55], sizes = [4, 144], strides = [1, 1]} : vector<4x216xf32> to vector<4x144xf32>
    %cst_71 = arith.constant dense<0.000000e+00> : vector<4x144xf32>
    %97 = tpu.matmul %95, %96, %cst_71 {dimension_numbers = #tpu.dot_dimension_numbers<[1], [0], [0], [1], [0, 0, 1, 1], [], []>} : vector<4x4xf32>, vector<4x144xf32>, vector<4x144xf32> -> vector<4x144xf32>
    %98 = arith.addf %93, %97 : vector<4x144xf32>
    %c0_72 = arith.constant 0 : index
    %c0_73 = arith.constant 0 : index
    %99 = vector.load %arg7[%c0_72, %c0_73] : memref<4x1xf32, #tpu.memory_space<vmem>>, vector<4x1xf32>
    %100 = vector.broadcast %99 : vector<4x1xf32> to vector<4x144xf32>
    %101 = arith.addf %98, %100 : vector<4x144xf32>
    %cst_74 = arith.constant 1.000000e+00 : f32
    %102 = vector.broadcast %cst_74 : f32 to vector<4x144xf32>
    %103 = arith.mulf %101, %102 : vector<4x144xf32>
    %104 = vector.extract_strided_slice %1 {offsets = [0, 55], sizes = [4, 144], strides = [1, 1]} : vector<4x254xf32> to vector<4x144xf32>
    %105 = arith.addf %103, %104 : vector<4x144xf32>
    %c0_75 = arith.constant 0 : index
    %c0_76 = arith.constant 0 : index
    %c0_77 = arith.constant 0 : index
    %c0_78 = arith.constant 0 : index
    %106 = vector.load %arg8[%c0_75, %c0_76, %c0_77, %c0_78] : memref<1x1x4x144xf32, #tpu.memory_space<vmem>>, vector<1x1x4x144xf32>
    %107 = vector.shape_cast %106 : vector<1x1x4x144xf32> to vector<4x144xf32>
    %108 = vector.shape_cast %105 : vector<4x144xf32> to vector<1x1x4x144xf32>
    tpu.vector_store %arg8[%c0_75, %c0_76, %c0_77, %c0_78], %108 {strides = array<i32>} : memref<1x1x4x144xf32, #tpu.memory_space<vmem>>, vector<1x1x4x144xf32>,
    return
  }
  func.func @transform_0(%arg0: i32, %arg1: i32) -> (i32, i32, i32, i32) {
    %c0_i32 = arith.constant 0 : i32
    %c0_i32_0 = arith.constant 0 : i32
    %c0_i32_1 = arith.constant 0 : i32
    return %arg0, %arg1, %c0_i32, %c0_i32_0 : i32, i32, i32, i32
  }
  func.func @transform_1(%arg0: i32, %arg1: i32) -> (i32, i32, i32) {
    %c0_i32 = arith.constant 0 : i32
    %c0_i32_0 = arith.constant 0 : i32
    %c0_i32_1 = arith.constant 0 : i32
    return %arg1, %c0_i32, %c0_i32_0 : i32, i32, i32
  }
  func.func @transform_2(%arg0: i32, %arg1: i32) -> (i32, i32, i32) {
    %c0_i32 = arith.constant 0 : i32
    %c0_i32_0 = arith.constant 0 : i32
    %c0_i32_1 = arith.constant 0 : i32
    %c0_i32_2 = arith.constant 0 : i32
    return %c0_i32, %c0_i32_0, %c0_i32_1 : i32, i32, i32
  }
  func.func @transform_3(%arg0: i32, %arg1: i32) -> (i32, i32) {
    %c0_i32 = arith.constant 0 : i32
    %c0_i32_0 = arith.constant 0 : i32
    %c0_i32_1 = arith.constant 0 : i32
    return %c0_i32, %c0_i32_0 : i32, i32
  }
  func.func @transform_4(%arg0: i32, %arg1: i32) -> (i32, i32, i32) {
    %c0_i32 = arith.constant 0 : i32
    %c0_i32_0 = arith.constant 0 : i32
    %c0_i32_1 = arith.constant 0 : i32
    %c0_i32_2 = arith.constant 0 : i32
    return %c0_i32, %c0_i32_0, %c0_i32_1 : i32, i32, i32
  }
  func.func @transform_5(%arg0: i32, %arg1: i32) -> (i32, i32) {
    %c0_i32 = arith.constant 0 : i32
    %c0_i32_0 = arith.constant 0 : i32
    %c0_i32_1 = arith.constant 0 : i32
    return %c0_i32, %c0_i32_0 : i32, i32
  }
  func.func @transform_6(%arg0: i32, %arg1: i32) -> (i32, i32, i32, i32) {
    %c0_i32 = arith.constant 0 : i32
    %c0_i32_0 = arith.constant 0 : i32
    %c0_i32_1 = arith.constant 0 : i32
    return %arg0, %arg1, %c0_i32, %c0_i32_0 : i32, i32, i32, i32
  }
}

</mosaic_0001>

<bundles_post_ra>
// kernel: tpu_custom_call.1
= control target key start
LH: loop header
LB: loop body
LE: loop exit
PB: predicated region body
PF: predicated region fallthrough
CT: control target
= control target key end

     0   :  { %11 = vsyncpa [#allocation3], 0  ;;  %s2130_s0 = inlined_call_operand.vmem [shape: f32[2,2,4,254], index: 0, kind: input, shape index: {}]   ;;  %s2131_s1 = inlined_call_operand.vmem [shape: f32[2,1,216], index: 1, kind: input, shape index: {}]   ;;  %s2132_s2 = inlined_call_operand.vmem [shape: f32[9,4,4], index: 2, kind: input, shape index: {}]   ;;  %s2133_s3 = inlined_call_operand.vmem [shape: f32[4,1], index: 3, kind: input, shape index: {}]   ;;  %s2134_s4 = inlined_call_operand.vmem [shape: f32[9,4,4], index: 4, kind: input, shape index: {}]   ;;  %s2135_s5 = inlined_call_operand.vmem [shape: f32[4,1], index: 5, kind: input, shape index: {}]   ;;  %s2136_s6 = inlined_call_operand.hbm [shape: f32[2,2,4,144], index: 6, kind: output, shape index: {}]  }
   0x1   :  { %13 = vsyncpa [#allocation3 + $0x1], 0  ;;  %s1830_s21 = smov 0   ;;  %s1832_s22 = smov 0  }
   0x2   :  { %s1834_s23 = smov 0   ;;  %s1836_s24 = smov 0  }
   0x3   :  { %s1838_s25 = smov 0   ;;  %s1840_s26 = smov 0  }
   0x4   :  { %s1842_s27 = smov 0   ;;  %s1844_s28 = smov 0  }
   0x5 LB: > { %s1493_s29 = sadd.s32 4294967295, %s1779_s28   ;;  %s1494_s30 = sadd.s32 4294967294, %s1779_s28   ;;  %s1779_s28 = sphi %s1844_s28, %s19_s28   ;;  %s1775_s27 = sphi %s1842_s27, %s2148_s27   ;;  %s1771_s26 = sphi %s1840_s26, %s2147_s26   ;;  %s1767_s25 = sphi %s1838_s25, %s2146_s25   ;;  %s1763_s24 = sphi %s1836_s24, %s2145_s24   ;;  %s1759_s23 = sphi %s1834_s23, %s2144_s23   ;;  %s1755_s22 = sphi %s1832_s22, %s2143_s22   ;;  %s1751_s21 = sphi %s1830_s21, %s2142_s21  }
   0x6   : > { %s28_s7 = sadd.s32 1, %s1771_s26  ;;  %s31_s8 = sadd.s32 1, %s1775_s27 }
   0x7   : > { %p29_p0 = scmp.ge.s32.totalorder %s28_s7, 2  ;;  %p188_p1 = scmp.ne.s32.totalorder %s1759_s23, %s1755_s22 }
   0x8   : > { %p189_p2 = scmp.eq.s32.totalorder %s1493_s29, 3  ;;  %p194_p5 = scmp.ne.s32.totalorder %s1755_s22, %s1751_s21 }
   0x9   : > { %s2150_s7 = smov (%p29_p0, %s28_s7), 0  ;;  %s2152_s8 = smov (!%p29_p0, %s31_s8), %s1775_s27 }
   0xa   : > { %s174_s9 = ssub.s32 %s1771_s26, %s2150_s7  ;;  %p1881_p3 = por %p189_p2, %p188_p1 }
   0xb   : > { %p33_p4 = scmp.ge.s32.totalorder %s2152_s8, 2  ;;  %p195_p6 = scmp.eq.s32.totalorder %s1494_s30, 3 }
   0xc   : > { %p1497_p7 = scmp.ge.s32.totalorder %s1779_s28, 1  ;;  %p244_p9 = scmp.lt.s32.totalorder %s1779_s28, 5 }
   0xd   : > { %s2154_s8 = smov (%p33_p4, %s2152_s8), 0  ;;  %p1890_p8 = por %p195_p6, %p194_p5 }
   0xe   : > { %s173_s12 = ssub.s32 %s1775_s27, %s2154_s8  ;;  %s178_s13 = sadd.s32 1, %s1759_s23 }
   0xf   : > { %s175_s14 = sor.u32 %s174_s9, %s173_s12  ;;  %p245_p10 = pnand %p1497_p7, %p244_p9 }
  0x10   : > { %p176_p11 = scmp.eq.s32.totalorder %s175_s14, 0  ;;  %p282_p12 = scmp.lt.s32.totalorder (!%p245_p10), %s1767_s25, 1 }
  0x11   : > { %248 = sbr.rel (%p245_p10) target bundleno = 649 (0x289), region = 44  ;;  %p284_p13 = scmp.lt.s32.totalorder (!%p245_p10), %s1763_s24, 1 }
  0x12   : > { %s1899_s15 = scalar_select %p176_p11, %s1759_s23, %s178_s13  }
  0x13   : > { %s1781_s13 = smov (!%p245_p10), 127   ;;  %s1782_s14 = smov (!%p245_p10), 126  }
  0x14   : > { %s2137_s30 = smov (!%p245_p10), 91   ;;  %s1788_s9 = smov (!%p245_p10), 90  }
  0x16   : > { %s283_s16 = scalar_select %p282_p12, %s1767_s25, 1  ;;  %vm314_vm0 = vcmask 1043456   ;;  %vm310_vm1 = vcmask 31744   ;;  %v297_v19 = vld [vmem:[%s2132_s2] sm:$0xf]  ;;  %vm308_vm2 = vcmask 1039360  }
  0x17   : > { %s1905_s17 = scalar_select %p284_p13, %s1763_s24, 1  ;;  %v1503_v22 = vld [vmem:[%s2132_s2 + $0x4] sm:$0xf]  ;;  %vm478_vm3 = vcmask 900096   ;;  %v1517_v26 = vld [vmem:[%s2132_s2 + $0xc] sm:$0xf] }
  0x18   : > { %s1500_s18 = sshll.u32 %s283_s16, 2  ;;  %s1783_s16 = smov 110   ;;  %vm418_vm4 = vcmask 1031168   ;;  %v1512_v30 = vld [vmem:[%s2132_s2 + $0x8] sm:$0xf]  ;;  %vm538_vm5 = vcmask 891904  }
  0x19   : > { %s1499_s19 = sshll.u32 %s1905_s17, 1  ;;  %v1522_v33 = vld [vmem:[%s2132_s2 + $0x10] sm:$0xf]  ;;  %v829_v38 = vld [vmem:[%s2133_s3] sm:$0xf]  ;;  %v1789_v39 = vmov 0  }
  0x1a   : > { %s288_s20 = sadd.s32 %s1500_s18, %s1499_s19  ;;  %s1784_s18 = smov 109   ;;  %1682 = vset.pattern.permute.xlu1 %v1789_v39  ;;  %1683 = vset.pattern.permute.xlu2 %v1789_v39  ;;  %vm598_vm6 = vcmask 883712   ;;  %v1527_v40 = vld [vmem:[%s2132_s2 + $0x14] sm:$0xf]  ;;  %v1532_v42 = vld [vmem:[%s2132_s2 + $0x18] sm:$0xf] }
  0x1b   : > { %s1501_s29 = sshll.u32 %s288_s20, 2  ;;  %s1785_s20 = smov 108   ;;  %1684 = vset.pattern.permute.xlu0 %v1789_v39  ;;  %vm658_vm7 = vcmask 752640   ;;  %vm718_vm8 = vcmask 744448   ;;  %v1537_v46 = vld [vmem:[%s2132_s2 + $0x1c] sm:$0xf] }
  0x1c   : > { %s290_s12 = scalar_lea.vmem %s2130_s0, %s1501_s29  ;;  %s1786_s29 = smov 92   ;;  %vm778_vm9 = vcmask 736256   ;;  %v1542_v51 = vld [vmem:[%s2132_s2 + $0x20] sm:$0xf]  ;;  %v1556_v39 = vld [vmem:[%s2134_s4 + $0x8] sm:$0xf] }
  0x1d   : > { %v295_v0 = vld [vmem:[%s290_s12] sm:$0xff]  ;;  %s1790_s17 = smov 93   ;;  %s1792_s12 = smov 75   ;;  %vm907_vm10 = vcmask 908288   ;;  %vm1018_vm11 = vcmask 760832   ;;  %vm1187_vm12 = vcmask 613376  }
  0x1e   : > { %301 = vst [vmem:[#allocation1] ss:$2 sm:$0xff] %v295_v0  ;;  %vm1301_vm13 = vcmask 596992   ;;  %vm1244_vm14 = vcmask 605184   ;;  %vm1377_vm15 = vcmask 130052  }
  0x25   : > { %v302_v1 = vld.sshfl [vmem:[#allocation1] sm:$0xff pattern:$0x75316420]  ;;  %v303_v2 = vld.sshfl [vmem:[#allocation1 + $0x8] sm:$0xff pattern:$0x75316420] }
  0x26   : > { %304 = vrot.lane.b32.xlu0 %v302_v1, %s1781_s13  ;;  %359 = vst [vmem:[#allocation1] ss:$2 sm:$0xff] %v295_v0 }
  0x2d   : > { %v360_v3 = vld.sshfl [vmem:[#allocation1] sm:$0xff pattern:$0x75316420]  ;;  %v361_v4 = vld.sshfl [vmem:[#allocation1 + $0x8] sm:$0xff pattern:$0x75316420] }
  0x2e   : > { %411 = vst [vmem:[#allocation1] ss:$2 sm:$0xff] %v295_v0  ;;  %306 = vrot.lane.b32.xlu0 %v303_v2, %s1781_s13  ;;  %1508 = vmatpush.msk.msra.mxu2 %vm314_vm0, %v360_v3  ;;  %s1793_s13 = smov 73  }
  0x2f   : > { %1510 = vmatpush.msk.msra.mxu3 %vm314_vm0, %v361_v4  ;;  %1509 = vmatmul.msk.f32.vlgmr.msra.gmra.mxu2 %vm310_vm1, %v297_v19 }
  0x30   : > { %1511 = vmatmul.msk.f32.vlgmr.msra.gmra.mxu3 %vm310_vm1, %v297_v19 }
  0x35   : > { %v412_v5 = vld.sshfl [vmem:[#allocation1] sm:$0xff pattern:$0x75316420]  ;;  %v413_v6 = vld.sshfl [vmem:[#allocation1 + $0x8] sm:$0xff pattern:$0x75316420] }
  0x36   : > { %414 = vrot.lane.b32.xlu1 %v412_v5, %s1782_s14  ;;  %471 = vst [vmem:[#allocation1] ss:$2 sm:$0xff] %v295_v0 }
  0x3d   : > { %v472_v7 = vld.sshfl [vmem:[#allocation1] sm:$0xff pattern:$0x75316420]  ;;  %v473_v8 = vld.sshfl [vmem:[#allocation1 + $0x8] sm:$0xff pattern:$0x75316420] }
  0x3e   : > { %416 = vrot.lane.b32.xlu1 %v413_v6, %s1782_s14  ;;  %531 = vst [vmem:[#allocation1] ss:$2 sm:$0xff] %v295_v0  ;;  %474 = vrot.lane.b32.xlu2 %v472_v7, %s1783_s16  ;;  %s2141_s14 = smov 91  }
  0x45   : > { %v532_v9 = vld.sshfl [vmem:[#allocation1] sm:$0xff pattern:$0x75316420]  ;;  %v533_v10 = vld.sshfl [vmem:[#allocation1 + $0x8] sm:$0xff pattern:$0x75316420] }
  0x46   : > { %534 = vrot.lane.b32.xlu0 %v532_v9, %s1784_s18  ;;  %536 = vrot.lane.b32.xlu1 %v533_v10, %s1784_s18  ;;  %591 = vst [vmem:[#allocation1] ss:$2 sm:$0xff] %v295_v0 }
  0x47   : > { %476 = vrot.lane.b32.xlu2 %v473_v8, %s1783_s16 }
  0x4d   : > { %v593_v11 = vld.sshfl [vmem:[#allocation1 + $0x8] sm:$0xff pattern:$0x75316420]  ;;  %v592_v12 = vld.sshfl [vmem:[#allocation1] sm:$0xff pattern:$0x75316420] }
  0x4e   : > { %596 = vrot.lane.b32.xlu0 %v593_v11, %s1785_s20  ;;  %651 = vst [vmem:[#allocation1] ss:$2 sm:$0xff] %v295_v0 }
  0x4f   : > { %594 = vrot.lane.b32.xlu2 %v592_v12, %s1785_s20  ;;  %s1593_s20 = sshll.u32 %s1767_s25, 2 }
  0x55   : > { %v652_v13 = vld.sshfl [vmem:[#allocation1] sm:$0xff pattern:$0x75316420]  ;;  %v653_v14 = vld.sshfl [vmem:[#allocation1 + $0x8] sm:$0xff pattern:$0x75316420] }
  0x56   : > { %654 = vrot.lane.b32.xlu1 %v652_v13, %s1786_s29  ;;  %711 = vst [vmem:[#allocation1] ss:$2 sm:$0xff] %v295_v0 }
  0x57   : > { %656 = vrot.lane.b32.xlu2 %v653_v14, %s1786_s29 }
  0x5d   : > { %v713_v15 = vld.sshfl [vmem:[#allocation1 + $0x8] sm:$0xff pattern:$0x75316420]  ;;  %v712_v16 = vld.sshfl [vmem:[#allocation1] sm:$0xff pattern:$0x75316420] }
  0x5e   : > { %716 = vrot.lane.b32.xlu1 %v713_v15, %s2137_s30  ;;  %714 = vrot.lane.b32.xlu0 %v712_v16, %s2137_s30  ;;  %771 = vst [vmem:[#allocation1] ss:$2 sm:$0xff] %v295_v0  ;;  %s294_s30 = scalar_lea.vmem %s2131_s1, %s1499_s19  ;;  %s1791_s19 = smov 111  }
  0x65   : > { %v773_v17 = vld.sshfl [vmem:[#allocation1 + $0x8] sm:$0xff pattern:$0x75316420]  ;;  %v772_v18 = vld.sshfl [vmem:[#allocation1] sm:$0xff pattern:$0x75316420] }
  0x66   : > { %776 = vrot.lane.b32.xlu0 %v773_v17, %s1788_s9  ;;  %774 = vrot.lane.b32.xlu2 %v772_v18, %s1788_s9  ;;  %1360 = vst [vmem:[#allocation1] ss:$2 sm:$0xff] %v295_v0 }
  0x67   : > { %832 = vperm.xlu1 %1682, %v829_v38  }
  0x98   : > { %v305_v20 = vpop.permute.xlu0 %304  ;;  %v475_v21 = vpop.permute.xlu2 %474 }
  0xa0   : > { %v307_v23 = vpop.permute.xlu0 %306 }
  0xa1   : > { %v309_v24 = vsel %vm308_vm2, %v305_v20, %v307_v23  ;;  %1506 = vmatpush.msk.msra.mxu1 %vm314_vm0, %v307_v23  ;;  %v477_v25 = vpop.permute.xlu2 %476 }
  0xa2   : > { %1504 = vmatpush.msk.msra.mxu0 %vm314_vm0, %v309_v24  ;;  %1507 = vmatmul.msk.f32.vlgmr.msra.gmra.mxu1 %vm310_vm1, %v1503_v22  ;;  %v479_v27 = vsel %vm478_vm3, %v475_v21, %v477_v25  ;;  %v296_v21 = vld [vmem:[%s294_s30] sm:$0x3] }
  0xa3   : > { %1505 = vmatmul.msk.f32.vlgmr.msra.gmra.mxu0 %vm310_vm1, %v1503_v22  ;;  %1518 = vmatpush.msk.msrb.mxu2 %vm314_vm0, %v479_v27 }
  0xa4   : > { %1519 = vmatmul.msk.f32.vlgmr.msrb.gmra.mxu2 %vm310_vm1, %v1517_v26  ;;  %1520 = vmatpush.msk.msrb.mxu3 %vm314_vm0, %v477_v25 }
  0xa5   : > { %1521 = vmatmul.msk.f32.vlgmr.msrb.gmra.mxu3 %vm310_vm1, %v1517_v26  ;;  %v841_v26 = vperm.slane %v296_v21, 1 }
  0xa8   : > { %v415_v28 = vpop.permute.xlu1 %414 }
  0xa9   : > { %v595_v29 = vpop.permute.xlu2 %594 }
  0xb0   : > { %v417_v31 = vpop.permute.xlu1 %416 }
  0xb1   : > { %v419_v32 = vsel %vm418_vm4, %v415_v28, %v417_v31  ;;  %1515 = vmatpush.msk.msrb.mxu1 %vm314_vm0, %v417_v31  ;;  %v657_v34 = vpop.permute.xlu2 %656  ;;  %v840_v28 = vperm.slane %v296_v21, 0 }
  0xb2   : > { %1513 = vmatpush.msk.msrb.mxu0 %vm314_vm0, %v419_v32  ;;  %1516 = vmatmul.msk.f32.vlgmr.msrb.gmra.mxu1 %vm310_vm1, %v1512_v30  ;;  %v386_v58 = vpop.f32.mrf.mxu2 }
  0xb3   : > { %1514 = vmatmul.msk.f32.vlgmr.msrb.gmra.mxu0 %vm310_vm1, %v1512_v30  ;;  %v406_v56 = vpop.f32.mrf.mxu3 }
  0xb8   : > { %v535_v35 = vpop.permute.xlu0 %534  ;;  %v537_v36 = vpop.permute.xlu1 %536 }
  0xb9   : > { %v539_v37 = vsel %vm538_vm5, %v535_v35, %v537_v36  ;;  %1525 = vmatpush.msk.msra.mxu1 %vm314_vm0, %v537_v36 }
  0xba   : > { %1523 = vmatpush.msk.msra.mxu0 %vm314_vm0, %v539_v37  ;;  %1526 = vmatmul.msk.f32.vlgmr.msra.gmra.mxu1 %vm310_vm1, %v1522_v33 }
  0xbb   : > { %1524 = vmatmul.msk.f32.vlgmr.msra.gmra.mxu0 %vm310_vm1, %v1522_v33  ;;  %1535 = vmatpush.msk.msrb.mxu1 %vm314_vm0, %v657_v34 }
  0xc0   : > { %v597_v41 = vpop.permute.xlu0 %596  ;;  %v775_v50 = vpop.permute.xlu2 %774 }
  0xc1   : > { %v599_v43 = vsel %vm598_vm6, %v595_v29, %v597_v41  ;;  %1530 = vmatpush.msk.msra.mxu3 %vm314_vm0, %v597_v41 }
  0xc2   : > { %1528 = vmatpush.msk.msra.mxu2 %vm314_vm0, %v599_v43  ;;  %1531 = vmatmul.msk.f32.vlgmr.msra.gmra.mxu3 %vm310_vm1, %v1527_v40 }
  0xc3   : > { %1529 = vmatmul.msk.f32.vlgmr.msra.gmra.mxu2 %vm310_vm1, %v1527_v40  ;;  %1536 = vmatmul.msk.f32.vlgmr.msrb.gmra.mxu1 %vm310_vm1, %v1532_v42 }
  0xc8   : > { %v655_v44 = vpop.permute.xlu1 %654 }
  0xc9   : > { %v659_v45 = vsel %vm658_vm7, %v655_v44, %v657_v34  ;;  %v1547_v34 = vld [vmem:[%s2134_s4 + $0x4] sm:$0xf] }
  0xca   : > { %1533 = vmatpush.msk.msrb.mxu0 %vm314_vm0, %v659_v45  ;;  %v1566_v45 = vld [vmem:[%s2134_s4 + $0x10] sm:$0xf] }
  0xcb   : > { %1534 = vmatmul.msk.f32.vlgmr.msrb.gmra.mxu0 %vm310_vm1, %v1532_v42 }
  0xd0   : > { %v717_v47 = vpop.permute.xlu1 %716  ;;  %v715_v48 = vpop.permute.xlu0 %714 }
  0xd1   : > { %v719_v49 = vsel %vm718_vm8, %v715_v48, %v717_v47  ;;  %1540 = vmatpush.msk.msrb.mxu3 %vm314_vm0, %v717_v47  ;;  %v846_v47 = vld [vmem:[%s2134_s4] sm:$0xf] }
  0xd2   : > { %1538 = vmatpush.msk.msrb.mxu2 %vm314_vm0, %v719_v49  ;;  %1541 = vmatmul.msk.f32.vlgmr.msrb.gmra.mxu3 %vm310_vm1, %v1537_v46  ;;  %v1361_v49 = vld.sshfl [vmem:[#allocation1] sm:$0xff pattern:$0x75316420] }
  0xd3   : > { %1539 = vmatmul.msk.f32.vlgmr.msrb.gmra.mxu2 %vm310_vm1, %v1537_v46 }
  0xd8   : > { %v777_v52 = vpop.permute.xlu0 %776 }
  0xd9   : > { %v779_v53 = vsel %vm778_vm9, %v775_v50, %v777_v52  ;;  %1545 = vmatpush.msk.msra.mxu1 %vm314_vm0, %v777_v52  ;;  %v833_v22 = vpop.permute.xlu1 %832  ;;  %v1362_v50 = vld.sshfl [vmem:[#allocation1 + $0x8] sm:$0xff pattern:$0x75316420] }
  0xda   : > { %1543 = vmatpush.msk.msra.mxu0 %vm314_vm0, %v779_v53  ;;  %1546 = vmatmul.msk.f32.vlgmr.msra.gmra.mxu1 %vm310_vm1, %v1542_v51 }
  0xdb   : > { %1544 = vmatmul.msk.f32.vlgmr.msra.gmra.mxu0 %vm310_vm1, %v1542_v51  ;;  %v1352_v51 = vld [vmem:[%s2135_s5] sm:$0xf] }
 0x11f   : > { %v356_v54 = vpop.f32.mrf.mxu1 }
 0x120   : > { %v336_v55 = vpop.f32.mrf.mxu0  ;;  %v407_v60 = vadd.f32 %v406_v56, %v356_v54 }
 0x121   : > { %v387_v61 = vadd.f32 %v386_v58, %v336_v55  ;;  %v1561_v55 = vld [vmem:[%s2134_s4 + $0xc] sm:$0xf] }
 0x127   : > { %v504_v1 = vpop.f32.mrf.mxu2 }
 0x128   : > { %v524_v62 = vpop.f32.mrf.mxu3 }
 0x12f   : > { %v464_v57 = vpop.f32.mrf.mxu1 }
 0x130   : > { %v444_v59 = vpop.f32.mrf.mxu0  ;;  %v468_v0 = vadd.f32 %v464_v57, %v407_v60  ;;  %v1576_v60 = vld [vmem:[%s2134_s4 + $0x18] sm:$0xf] }
 0x131   : > { %v467_v2 = vadd.f32 %v444_v59, %v387_v61  ;;  %v1571_v61 = vld [vmem:[%s2134_s4 + $0x14] sm:$0xf] }
 0x132   : > { %v528_v4 = vadd.f32 %v524_v62, %v468_v0 }
 0x133   : > { %v527_v5 = vadd.f32 %v504_v1, %v467_v2 }
 0x137   : > { %v584_v63 = vpop.f32.mrf.mxu1 }
 0x138   : > { %v564_v3 = vpop.f32.mrf.mxu0  ;;  %v588_v7 = vadd.f32 %v584_v63, %v528_v4 }
 0x139   : > { %v587_v9 = vadd.f32 %v564_v3, %v527_v5  ;;  %v1586_v3 = vld [vmem:[%s2134_s4 + $0x20] sm:$0xf] }
 0x140   : > { %v704_v10 = vpop.f32.mrf.mxu1 }
 0x145   : > { %v644_v6 = vpop.f32.mrf.mxu3 }
 0x146   : > { %v624_v8 = vpop.f32.mrf.mxu2  ;;  %v648_v11 = vadd.f32 %v644_v6, %v588_v7  ;;  %v1581_v6 = vld [vmem:[%s2134_s4 + $0x1c] sm:$0xf] }
 0x147   : > { %v647_v13 = vadd.f32 %v624_v8, %v587_v9 }
 0x148   : > { %v684_v12 = vpop.f32.mrf.mxu0  ;;  %v708_v14 = vadd.f32 %v704_v10, %v648_v11 }
 0x149   : > { %v707_v15 = vadd.f32 %v684_v12, %v647_v13 }
 0x155   : > { %v764_v16 = vpop.f32.mrf.mxu3 }
 0x156   : > { %v768_v17 = vadd.f32 %v764_v16, %v708_v14  ;;  %v744_v18 = vpop.f32.mrf.mxu2 }
 0x157   : > { %v767_v19 = vadd.f32 %v744_v18, %v707_v15  ;;  %v824_v20 = vpop.f32.mrf.mxu1 }
 0x158   : > { %v828_v23 = vadd.f32 %v824_v20, %v768_v17  ;;  %v804_v24 = vpop.f32.mrf.mxu0 }
 0x159   : > { %v827_v25 = vadd.f32 %v804_v24, %v767_v19 }
 0x15a   : > { %v836_v27 = vadd.f32 %v833_v22, %v828_v23 }
 0x15b   : > { %v835_v29 = vadd.f32 %v833_v22, %v827_v25 }
 0x15c   : > { %v838_v30 = vmax.f32 %v836_v27, 0.0 }
 0x15d   : > { %v837_v31 = vmax.f32 %v835_v29, 0.0 }
 0x15e   : > { %v845_v32 = vmul.f32 %v841_v26, %v838_v30 }
 0x15f   : > { %v844_v33 = vmul.f32 %v840_v28, %v837_v31 }
 0x160   : > { %960 = vrot.lane.b32.xlu1 %v845_v32, %s1784_s18  ;;  %853 = vrot.lane.b32.xlu2 %v845_v32, %s1783_s16 }
 0x161   : > { %851 = vrot.lane.b32.xlu0 %v844_v33, %s1783_s16  ;;  %s1794_s16 = smov 74  }
 0x168   : > { %1016 = vrot.lane.b32.xlu1 %v845_v32, %s1790_s17  ;;  %1073 = vrot.lane.b32.xlu2 %v845_v32, %s1786_s29 }
 0x169   : > { %905 = vrot.lane.b32.xlu0 %v845_v32, %s1791_s19 }
 0x170   : > { %903 = vrot.lane.b32.xlu1 %v844_v33, %s1791_s19  ;;  %958 = vrot.lane.b32.xlu2 %v844_v33, %s1784_s18  ;;  %s279_s18 = sand.u32 1, %s1755_s22  }
 0x171   : > { %1071 = vrot.lane.b32.xlu0 %v844_v33, %s1786_s29  ;;  %s1498_s29 = sshll.u32 %s279_s18, 3 }
 0x178   : > { %1183 = vrot.lane.b32.xlu1 %v844_v33, %s1792_s12  ;;  %1014 = vrot.lane.b32.xlu2 %v844_v33, %s1790_s17  ;;  %s281_s17 = scalar_lea.vmem [#allocation2], %s1498_s29 }
 0x179   : > { %1185 = vrot.lane.b32.xlu0 %v845_v32, %s1792_s12  ;;  %s1396_s19 = sshll.u32 %s281_s17, 4  ;;  %s1397_s19 = int_to_ptr.vmem [resolvable:$true] %s1396_s19 }
 0x180   : > { %1299 = vrot.lane.b32.xlu1 %v845_v32, %s1793_s13  ;;  %1129 = vrot.lane.b32.xlu2 %v845_v32, %s2141_s14 }
 0x181   : > { %1127 = vrot.lane.b32.xlu0 %v844_v33, %s2141_s14  ;;  %s1381_s14 = scalar_lea.sflag [#allocation3], %s279_s18 }
 0x188   : > { %1240 = vrot.lane.b32.xlu1 %v844_v33, %s1794_s16  ;;  %1297 = vrot.lane.b32.xlu2 %v844_v33, %s1793_s13 }
 0x189   : > { %1242 = vrot.lane.b32.xlu0 %v845_v32, %s1794_s16  ;;  %s1592_s16 = sshll.u32 %s1763_s24, 1 }
 0x190   : > { %1363 = vrot.lane.b32.xlu1 %v1361_v49, %s1793_s13  ;;  %1355 = vperm.xlu2 %1683, %v1352_v51  }
 0x191   : > { %1365 = vrot.lane.b32.xlu0 %v1362_v50, %s1793_s13  ;;  %s1392_s13 = sadd.s32 %s1593_s20, %s1592_s16 }
 0x192   : > { %s1594_s9 = sshll.u32 %s1392_s13, 2 }
 0x193   : > { %s1394_s30 = scalar_lea.hbm %s2136_s6, %s1594_s9  ;;  %s1705_s9 = scalar_lea.hbm %s2136_s6, 32 }
 0x194   : > { %s1398_s12 = sshll.u32 %s1394_s30, 4  ;;  %s1399_s12 = int_to_ptr.hbm [resolvable:$true] %s1398_s12 }
 0x195   : > { %s1699_s16 = sshra.s32 %s1399_s12, 4  ;;  %s1700_s16 = int_to_ptr.hbm [resolvable:$true] %s1699_s16 }
 0x196   : > { %s1701_s20 = scalar_lea.hbm %s1700_s16, 8  ;;  %p1706_p4 = scmp.lt.s32.totalorder %s1700_s16, %s2136_s6 }
 0x197   : > { %p1702_p0 = scmp.ne.s32.totalorder %s1700_s16, %s1701_s20  ;;  %p1707_p5 = scmp.lt.s32.totalorder %s1705_s9, %s1701_s20 }
 0x199   : > { %p1703_p1 = pnand %p1702_p0, %p1881_p3  ;;  %p1708_p6 = por %p1707_p5, %p1706_p4 }
 0x19b   : > { %p1704_p2 = pneg %p1703_p1 }
 0x19d   : > { %p1709_p7 = pnand %p1708_p6, %p1704_p2 }
 0x1ba   : > { %v854_v35 = vpop.permute.xlu2 %853 }
 0x1bb   : > { %1550 = vmatpush.msk.msra.mxu3 %vm314_vm0, %v854_v35 }
 0x1bc   : > { %1551 = vmatmul.msk.f32.vlgmr.msra.gmra.mxu3 %vm310_vm1, %v1547_v34 }
 0x1c2   : > { %v1074_v36 = vpop.permute.xlu2 %1073 }
 0x1ca   : > { %v959_v37 = vpop.permute.xlu2 %958 }
 0x1d2   : > { %v961_v38 = vpop.permute.xlu1 %960  ;;  %v1015_v41 = vpop.permute.xlu2 %1014 }
 0x1d3   : > { %1559 = vmatpush.msk.msrb.mxu3 %vm314_vm0, %v961_v38  ;;  %v852_v40 = vpop.permute.xlu0 %851  ;;  %v962_v43 = vsel %vm538_vm5, %v959_v37, %v961_v38 }
 0x1d4   : > { %v855_v42 = vsel %vm478_vm3, %v852_v40, %v854_v35  ;;  %1560 = vmatmul.msk.f32.vlgmr.msrb.gmra.mxu3 %vm310_vm1, %v1556_v39 }
 0x1d5   : > { %1569 = vmatpush.msk.msra.mxu3 %vm314_vm0, %v1074_v36  ;;  %1548 = vmatpush.msk.msra.mxu2 %vm314_vm0, %v855_v42 }
 0x1d6   : > { %1549 = vmatmul.msk.f32.vlgmr.msra.gmra.mxu2 %vm310_vm1, %v1547_v34 }
 0x1d7   : > { %1557 = vmatpush.msk.msrb.mxu2 %vm314_vm0, %v962_v43 }
 0x1da   : > { %v1017_v44 = vpop.permute.xlu1 %1016  ;;  %v1130_v48 = vpop.permute.xlu2 %1129 }
 0x1db   : > { %v906_v46 = vpop.permute.xlu0 %905  ;;  %v1019_v57 = vsel %vm1018_vm11, %v1015_v41, %v1017_v44 }
 0x1dc   : > { %1554 = vmatpush.msk.msrb.mxu1 %vm314_vm0, %v906_v46  ;;  %1570 = vmatmul.msk.f32.vlgmr.msra.gmra.mxu3 %vm310_vm1, %v1566_v45 }
 0x1dd   : > { %1555 = vmatmul.msk.f32.vlgmr.msrb.gmra.mxu1 %vm310_vm1, %v846_v47 }
 0x1de   : > { %1564 = vmatpush.msk.msra.mxu1 %vm314_vm0, %v1017_v44  ;;  %1558 = vmatmul.msk.f32.vlgmr.msrb.gmra.mxu2 %vm310_vm1, %v1556_v39 }
 0x1e0   : > { %1574 = vmatpush.msk.msrb.mxu1 %vm314_vm0, %v1130_v48 }
 0x1e2   : > { %v904_v52 = vpop.permute.xlu1 %903  ;;  %v1298_v63 = vpop.permute.xlu2 %1297 }
 0x1e3   : > { %v908_v53 = vsel %vm907_vm10, %v904_v52, %v906_v46  ;;  %v1072_v54 = vpop.permute.xlu0 %1071 }
 0x1e4   : > { %v1075_v56 = vsel %vm658_vm7, %v1072_v54, %v1074_v36  ;;  %1552 = vmatpush.msk.msrb.mxu0 %vm314_vm0, %v908_v53 }
 0x1e5   : > { %1553 = vmatmul.msk.f32.vlgmr.msrb.gmra.mxu0 %vm310_vm1, %v846_v47  ;;  %1567 = vmatpush.msk.msra.mxu2 %vm314_vm0, %v1075_v56 }
 0x1e6   : > { %1562 = vmatpush.msk.msra.mxu0 %vm314_vm0, %v1019_v57  ;;  %1565 = vmatmul.msk.f32.vlgmr.msra.gmra.mxu1 %vm310_vm1, %v1561_v55 }
 0x1e7   : > { %1568 = vmatmul.msk.f32.vlgmr.msra.gmra.mxu2 %vm310_vm1, %v1566_v45 }
 0x1ea   : > { %v1184_v58 = vpop.permute.xlu1 %1183  ;;  %v1356_v34 = vpop.permute.xlu2 %1355 }
 0x1eb   : > { %v1186_v59 = vpop.permute.xlu0 %1185 }
 0x1ec   : > { %v1188_v62 = vsel %vm1187_vm12, %v1184_v58, %v1186_v59  ;;  %1579 = vmatpush.msk.msrb.mxu3 %vm314_vm0, %v1186_v59 }
 0x1ed   : > { %1563 = vmatmul.msk.f32.vlgmr.msra.gmra.mxu0 %vm310_vm1, %v1561_v55  ;;  %1577 = vmatpush.msk.msrb.mxu2 %vm314_vm0, %v1188_v62 }
 0x1ee   : > { %1580 = vmatmul.msk.f32.vlgmr.msrb.gmra.mxu3 %vm310_vm1, %v1576_v60  ;;  %1575 = vmatmul.msk.f32.vlgmr.msrb.gmra.mxu1 %vm310_vm1, %v1571_v61 }
 0x1ef   : > { %1578 = vmatmul.msk.f32.vlgmr.msrb.gmra.mxu2 %vm310_vm1, %v1576_v60 }
 0x1f2   : > { %v1300_v0 = vpop.permute.xlu1 %1299 }
 0x1f3   : > { %v1302_v1 = vsel %vm1301_vm13, %v1298_v63, %v1300_v0  ;;  %1589 = vmatpush.msk.msra.mxu3 %vm314_vm0, %v1300_v0  ;;  %v1128_v2 = vpop.permute.xlu0 %1127 }
 0x1f4   : > { %v1131_v4 = vsel %vm718_vm8, %v1128_v2, %v1130_v48  ;;  %1587 = vmatpush.msk.msra.mxu2 %vm314_vm0, %v1302_v1 }
 0x1f5   : > { %1572 = vmatpush.msk.msrb.mxu0 %vm314_vm0, %v1131_v4 }
 0x1f6   : > { %1573 = vmatmul.msk.f32.vlgmr.msrb.gmra.mxu0 %vm310_vm1, %v1571_v61  ;;  %1590 = vmatmul.msk.f32.vlgmr.msra.gmra.mxu3 %vm310_vm1, %v1586_v3 }
 0x1f7   : > { %1588 = vmatmul.msk.f32.vlgmr.msra.gmra.mxu2 %vm310_vm1, %v1586_v3 }
 0x1fa   : > { %v1241_v5 = vpop.permute.xlu1 %1240 }
 0x1fb   : > { %v1243_v7 = vpop.permute.xlu0 %1242 }
 0x1fc   : > { %v1245_v8 = vsel %vm1244_vm14, %v1241_v5, %v1243_v7  ;;  %1584 = vmatpush.msk.msra.mxu1 %vm314_vm0, %v1243_v7 }
 0x1fd   : > { %1582 = vmatpush.msk.msra.mxu0 %vm314_vm0, %v1245_v8  ;;  %1585 = vmatmul.msk.f32.vlgmr.msra.gmra.mxu1 %vm310_vm1, %v1581_v6 }
 0x1fe   : > { %1583 = vmatmul.msk.f32.vlgmr.msra.gmra.mxu0 %vm310_vm1, %v1581_v6  ;;  %vm1378_vm1 = vmor %vm1377_vm15, %vm314_vm0 }
 0x202   : > { %v1364_v42 = vpop.permute.xlu1 %1363 }
 0x203   : > { %v1366_v43 = vpop.permute.xlu0 %1365 }
 0x204   : > { %v1367_v47 = vsel %vm1301_vm13, %v1364_v42, %v1366_v43 }
 0x23f   : > { %v900_v9 = vpop.f32.mrf.mxu3 }
 0x257   : > { %v1007_v12 = vpop.f32.mrf.mxu3 }
 0x259   : > { %v880_v10 = vpop.f32.mrf.mxu2 }
 0x25a   : > { %v953_v11 = vpop.f32.mrf.mxu1 }
 0x25b   : > { %v954_v20 = vadd.f32 %v953_v11, %v900_v9 }
 0x25d   : > { %v1011_v22 = vadd.f32 %v1007_v12, %v954_v20 }
 0x25f   : > { %v1120_v16 = vpop.f32.mrf.mxu3 }
 0x261   : > { %v987_v14 = vpop.f32.mrf.mxu2 }
 0x262   : > { %v933_v13 = vpop.f32.mrf.mxu0 }
 0x263   : > { %v1064_v15 = vpop.f32.mrf.mxu1  ;;  %v934_v17 = vadd.f32 %v933_v13, %v880_v10 }
 0x264   : > { %v1068_v24 = vadd.f32 %v1064_v15, %v1011_v22 }
 0x265   : > { %v1010_v21 = vadd.f32 %v987_v14, %v934_v17 }
 0x266   : > { %v1124_v30 = vadd.f32 %v1120_v16, %v1068_v24 }
 0x26a   : > { %v1044_v18 = vpop.f32.mrf.mxu0  ;;  %v1100_v19 = vpop.f32.mrf.mxu2 }
 0x26b   : > { %v1067_v23 = vadd.f32 %v1044_v18, %v1010_v21  ;;  %v1176_v25 = vpop.f32.mrf.mxu1 }
 0x26c   : > { %v1180_v32 = vadd.f32 %v1176_v25, %v1124_v30 }
 0x26d   : > { %v1123_v29 = vadd.f32 %v1100_v19, %v1067_v23 }
 0x271   : > { %v1233_v26 = vpop.f32.mrf.mxu3 }
 0x272   : > { %v1213_v27 = vpop.f32.mrf.mxu2  ;;  %v1237_v33 = vadd.f32 %v1233_v26, %v1180_v32 }
 0x273   : > { %v1156_v28 = vpop.f32.mrf.mxu0 }
 0x274   : > { %v1179_v31 = vadd.f32 %v1156_v28, %v1123_v29 }
 0x276   : > { %v1236_v35 = vadd.f32 %v1213_v27, %v1179_v31 }
 0x279   : > { %v1347_v37 = vpop.f32.mrf.mxu3 }
 0x27a   : > { %v1290_v36 = vpop.f32.mrf.mxu1  ;;  %v1327_v40 = vpop.f32.mrf.mxu2 }
 0x27b   : > { %v1294_v38 = vadd.f32 %v1290_v36, %v1237_v33  ;;  %v1270_v39 = vpop.f32.mrf.mxu0 }
 0x27c   : > { %v1293_v41 = vadd.f32 %v1270_v39, %v1236_v35 }
 0x27d   : > { %v1351_v44 = vadd.f32 %v1347_v37, %v1294_v38 }
 0x27e   : > { %v1350_v45 = vadd.f32 %v1327_v40, %v1293_v41 }
 0x27f   : > { %v1359_v46 = vadd.f32 %v1356_v34, %v1351_v44 }
 0x280   : > { %v1358_v48 = vadd.f32 %v1356_v34, %v1350_v45 }
 0x281   : > { %v1371_v49 = vadd.f32 %v1366_v43, %v1359_v46 }
 0x282   : > { %v1370_v50 = vadd.f32 %v1367_v47, %v1358_v48 }
 0x283   : > { %v1374_v51 = vrot.slane %v1371_v49, 4 }
 0x285   : > { %v1375_v52 = vsel %vm314_vm0, %v1370_v50, %v1374_v51 }
 0x286   : > { %1379 = vst.msk [vmem:[%s281_s17] sm:$0xff] %vm1378_vm1, %v1375_v52 }
 0x287   : > { %1712 = shalt.err (!%p1709_p7)
}
 0x288   : > { %1597 = dma.vmem_to_hbm [thread:$0]  (%p1881_p3), %s1397_s19, 128, %s1399_s12, %s1381_s14  }
 0x289 PF: > { %p1603_p9 = scmp.ge.s32.totalorder %s1779_s28, 2  ;;  %s1410_s18 = sand.u32 1, %s1751_s21  }
 0x28a   : > { %s1411_s30 = scalar_lea.sflag [#allocation3], %s1410_s18 }
 0x28b   : > { %p1600_p10 = pnand %p1603_p9, %p1890_p8 }
 0x28d   : > { %p1601_p11 = pneg %p1600_p10 }
 0x28f   : > { %1746 = dma.done.wait (%p1601_p11), %s1411_s30, 128  }
 0x290   : > { %1748 = vsyncadd (%p1601_p11), %s1411_s30, 4294967168  ;;  %s19_s28 = sadd.s32 1, %s1779_s28   ;;  %s2142_s21 = smov %s1755_s22 }
 0x291   : > { %p16_p12 = scmp.ge.s32.totalorder %s19_s28, 6   ;;  %s2143_s22 = smov %s1759_s23 }
 0x292   : > { %s2144_s23 = smov %s1899_s15  ;;  %s2145_s24 = smov %s1771_s26 }
 0x293   : > { %s2146_s25 = smov %s1775_s27  ;;  %s2147_s26 = smov %s2150_s7 }
 0x294   : > { %s2148_s27 = smov %s2154_s8  ;;  %18 = sbr.rel (!%p16_p12) target bundleno = 5 (0x5), region = 98 }
 0x299   :  { %1417 = vsyncpa [#allocation3], 1 }
 0x29a   :  { %1419 = vsyncpa [#allocation3 + $0x1], 1 }

</bundles_post_ra>
